<compile_context>
chip_gen: v7x
topology: tpu7x:2x2x1
jax: 0.10.0
libtpu: 0.0.40
codegen_flags: <defaults>
</compile_context>

<pallas_src>
import functools

import jax
import jax.numpy as jnp
import numpy as np
from jax import lax
from jax.experimental import pallas as pl
from jax.experimental.pallas import tpu as pltpu

K = 3        # kernel_size
EPS = 1e-5   # nn.BatchNorm2d default eps


def _lane_pad(W):
    # Halo width (>= W+1) rounded up to a 128-lane boundary so the interior
    # store into the line buffer stays lane-aligned.
    return ((W + 1 + 127) // 128) * 128


def _const_spec(shape):
    # Grid-invariant operand: constant index_map + single pipeline buffer
    # (no pointless double buffer for data that never changes across the grid).
    zeros = (0,) * len(shape)
    return pl.BlockSpec(shape, lambda n: zeros, pipeline_mode=pl.Buffered(1))


def bn_stats_kernel(x_ref, sum_ref, sq_ref):
    # x_ref: (Nb, C, HW) block (several batch elements per grid step).
    # sum_ref / sq_ref: (C, 1) f32 accumulators resident across the grid axis.
    @pl.when(pl.program_id(0) == 0)
    def _():
        sum_ref[...] = jnp.zeros_like(sum_ref)
        sq_ref[...] = jnp.zeros_like(sq_ref)

    x = x_ref[...].astype(jnp.float32)            # (Nb, C, HW)
    xs = jnp.sum(x, axis=0)                       # (C, HW)
    xq = jnp.sum(x * x, axis=0)                   # (C, HW)
    sum_ref[...] += jnp.sum(xs, axis=1, keepdims=True)
    sq_ref[...] += jnp.sum(xq, axis=1, keepdims=True)


def resblock_kernel(x_ref, scale_ref, bias_ref, w_ref, b_ref,
                    lmask_ref, rmask_ref, o_ref, line_ref, *, H, W):
    # x_ref:     (1, C, HW)        input activations (native dtype)
    # scale_ref: (C, 1)   f32      folded BN scale = gamma / sqrt(var + eps)
    # bias_ref:  (C, 1)   f32      folded BN bias  = beta - mean * scale
    # w_ref:     (9, C_out, C) bf16  conv weights, one (C_out, C) slab per tap
    # b_ref:     (C_out, 1) f32    conv bias
    # lmask_ref: (1, HW)  bf16     0 where column w == 0, else 1
    # rmask_ref: (1, HW)  bf16     0 where column w == W-1, else 1
    # o_ref:     (1, C_out, HW)    output, lane-dense (HW on lanes)
    # line_ref:  (C, 2*LPAD+HW) bf16 scratch: row-padded activations
    C = x_ref.shape[1]
    HW = H * W
    LPAD = _lane_pad(W)

    # Fused BatchNorm + ReLU on the VPU (f32), then a single cast to bf16.
    y = jnp.maximum(
        x_ref[0].astype(jnp.float32) * scale_ref[...] + bias_ref[...], 0.0
    ).astype(jnp.bfloat16)

    # Row-padded bf16 line buffer: zero only the halos (cheap; done every step
    # so it is safe under megacore grid partitioning), lane-aligned interior
    # store.  Top/bottom picture-border zeros come from the halos; the
    # left/right column wrap is masked below.
    line_ref[:, 0:LPAD] = jnp.zeros((C, LPAD), jnp.bfloat16)
    line_ref[:, LPAD + HW:] = jnp.zeros((C, LPAD), jnp.bfloat16)
    line_ref[:, LPAD:LPAD + HW] = y

    lmask = lmask_ref[...]        # (1, HW)
    rmask = rmask_ref[...]        # (1, HW)

    # 9 accumulating dots on the MXU (no materialized im2col "patches" slab):
    # each tap is a lane-shifted window of the line buffer (shift = dh*W + dw).
    acc = None
    for kh in range(K):
        for kw in range(K):
            off = (kh - 1) * W + (kw - 1)
            t = line_ref[:, LPAD + off:LPAD + off + HW]    # (C, HW) bf16
            if kw == 0:
                t = t * lmask                              # column w-1 missing
            elif kw == 2:
                t = t * rmask                              # column w+1 missing
            d = jnp.dot(w_ref[kh * K + kw], t,
                        preferred_element_type=jnp.float32)  # (C_out, HW) f32
            acc = d if acc is None else acc + d

    o_ref[...] = (acc + b_ref[...])[None].astype(o_ref.dtype)


@jax.jit
def resblock_forward(x_nchw, gamma, beta, conv_w, conv_b, eps=EPS):
    N, C_in, H, W = x_nchw.shape
    C_out = conv_w.shape[0]
    HW = H * W
    LPAD = _lane_pad(W)
    out_dtype = x_nchw.dtype
    itemsize = x_nchw.dtype.itemsize

    # Keep NCHW and the native activation dtype; just flatten the spatial dims
    # (free, contiguous reshape).  Both passes read x straight from HBM.
    x = x_nchw.reshape(N, C_in, HW)

    # Zero-pad channels to a multiple of 16 so the bf16 line buffer and the
    # per-tap weight slabs stay sublane-tile aligned (a no-op for realistic
    # ResNet channel counts).
    C = ((C_in + 15) // 16) * 16
    if C != C_in:
        x = jnp.pad(x, ((0, 0), (0, C - C_in), (0, 0)))
        gamma = jnp.pad(gamma, (0, C - C_in))
        beta = jnp.pad(beta, (0, C - C_in))
        conv_w = jnp.pad(conv_w, ((0, 0), (0, C - C_in), (0, 0), (0, 0)))

    # ---- Pass 1: per-channel batch statistics (blocked over several batch
    # elements per grid step; f32 accumulation). ----
    nb = 1
    for d in range(1, N + 1):
        if N % d == 0 and d * C * HW * itemsize <= (8 << 20):
            nb = d
    stats_vmem = int(min(100 << 20, max(32 << 20, 3 * nb * C * HW * itemsize)))

    sums, sqs = pl.pallas_call(
        bn_stats_kernel,
        out_shape=(jax.ShapeDtypeStruct((C, 1), jnp.float32),
                   jax.ShapeDtypeStruct((C, 1), jnp.float32)),
        grid_spec=pltpu.PrefetchScalarGridSpec(
            num_scalar_prefetch=0,
            grid=(N // nb,),
            in_specs=[pl.BlockSpec((nb, C, HW), lambda n: (n, 0, 0))],
            out_specs=(pl.BlockSpec((C, 1), lambda n: (0, 0)),
                       pl.BlockSpec((C, 1), lambda n: (0, 0))),
        ),
        compiler_params=pltpu.CompilerParams(
            dimension_semantics=("arbitrary",),
            vmem_limit_bytes=stats_vmem),
    )(x)

    count = float(N * HW)
    mean = sums / count
    var = sqs / count - mean * mean               # biased (training-mode) var
    scale = gamma.reshape(C, 1).astype(jnp.float32) / jnp.sqrt(var + eps)
    bias = beta.reshape(C, 1).astype(jnp.float32) - mean * scale

    # Conv weight OIHW -> (9, C_out, C): one (C_out, C) slab per (kh, kw) tap,
    # bf16 operands for the MXU (f32 accumulation in-kernel).
    w9 = jnp.transpose(conv_w, (2, 3, 0, 1)).reshape(K * K, C_out, C)
    w9 = w9.astype(jnp.bfloat16)
    b_col = conv_b.reshape(C_out, 1).astype(jnp.float32)

    # Grid-invariant left/right border masks, built once in the wrapper.
    col = jnp.arange(HW, dtype=jnp.int32) % W
    lmask = (col > 0).astype(jnp.bfloat16)[None, :]
    rmask = (col < W - 1).astype(jnp.bfloat16)[None, :]

    # Explicit scoped-VMEM budget (v5e default 16 MiB / v6e 32 MiB are too low
    # for big layers).  TODO(synk): for v7x-scale layers (C~256, HW~3136, only
    # 64 MiB physical VMEM) add an H-row tile grid axis (1-row halo) plus a
    # C_out tile axis so per-step VMEM stays well under budget and N==1
    # inference still exposes >=2 parallel grid steps for both TensorCores.
    est = (2 * C * HW * itemsize                    # double-buffered input
           + 2 * C_out * HW * out_dtype.itemsize    # double-buffered output
           + C * (2 * LPAD + HW) * 2                # bf16 line buffer
           + K * K * C_out * C * 2                  # bf16 weights (single buf)
           + 2 * C * 4 + C_out * 4 + 2 * HW * 2)    # scale/bias/masks
    vmem_limit = int(min(96 << 20, max(32 << 20, 2 * est)))

    kernel = functools.partial(resblock_kernel, H=H, W=W)
    out = pl.pallas_call(
        kernel,
        out_shape=jax.ShapeDtypeStruct((N, C_out, HW), out_dtype),
        grid_spec=pltpu.PrefetchScalarGridSpec(
            num_scalar_prefetch=0,
            grid=(N,),
            in_specs=[
                pl.BlockSpec((1, C, HW), lambda n: (n, 0, 0)),
                _const_spec((C, 1)),                 # BN scale
                _const_spec((C, 1)),                 # BN bias
                _const_spec((K * K, C_out, C)),      # conv weights (bf16)
                _const_spec((C_out, 1)),             # conv bias
                _const_spec((1, HW)),                # left mask
                _const_spec((1, HW)),                # right mask
            ],
            out_specs=pl.BlockSpec((1, C_out, HW), lambda n: (n, 0, 0)),
            scratch_shapes=[pltpu.VMEM((C, 2 * LPAD + HW), jnp.bfloat16)],
        ),
        compiler_params=pltpu.CompilerParams(
            dimension_semantics=("parallel",),
            vmem_limit_bytes=vmem_limit),
    )(x, scale, bias, w9, b_col, lmask, rmask)

    return out.reshape(N, C_out, H, W)            # free reshape back to NCHW


def resblock_reference(x, gamma, beta, conv_w, conv_b, eps=EPS):
    # Pure-JAX reference of the PyTorch forward (NCHW, full f32 precision).
    mean = jnp.mean(x, axis=(0, 2, 3), keepdims=True)
    var = jnp.var(x, axis=(0, 2, 3), keepdims=True)
    xn = (x - mean) / jnp.sqrt(var + eps)
    xn = xn * gamma[None, :, None, None] + beta[None, :, None, None]
    xr = jnp.maximum(xn, 0.0)
    out = lax.conv_general_dilated(
        xr, conv_w, window_strides=(1, 1), padding=((1, 1), (1, 1)),
        dimension_numbers=("NCHW", "OIHW", "NCHW"),
        precision=lax.Precision.HIGHEST)
    return out + conv_b[None, :, None, None]


if __name__ == "__main__":
    N, C_in, C_out, H, W = 2, 4, 8, 16, 16

    key = jax.random.PRNGKey(0)
    kx, kg, kb, kw, kc = jax.random.split(key, 5)

    x = jax.random.normal(kx, (N, C_in, H, W), jnp.float32)

    # Deterministic synthetic parameters (shapes from ResBlock.__init__).
    gamma = 1.0 + 0.1 * jax.random.normal(kg, (C_in,), jnp.float32)  # bn1.weight
    beta = 0.1 * jax.random.normal(kb, (C_in,), jnp.float32)         # bn1.bias
    fan_in = C_in * K * K
    bound = 1.0 / np.sqrt(fan_in)
    conv_w = jax.random.uniform(kw, (C_out, C_in, K, K), jnp.float32, -bound, bound)
    conv_b = jax.random.uniform(kc, (C_out,), jnp.float32, -bound, bound)

    out = jax.block_until_ready(resblock_forward(x, gamma, beta, conv_w, conv_b))
    ref = resblock_reference(x, gamma, beta, conv_w, conv_b)

    # Tolerance reflects bf16 MXU operands with f32 accumulation (~2^-8 relative
    # rounding per product on O(1) activations => few-1e-3 absolute error).
    np.testing.assert_allclose(np.asarray(out), np.asarray(ref),
                               rtol=2e-2, atol=2e-2)

    print("KERNEL_OK")
</pallas_src>

<mosaic_0001>
module attributes {stable_mosaic.version = 11 : i64} {
  func.func @bn_stats_kernel(%arg0: i32, %arg1: memref<2x16x256xf32, #tpu.memory_space<vmem>>, %arg2: memref<16x1xf32, #tpu.memory_space<vmem>>, %arg3: memref<16x1xf32, #tpu.memory_space<vmem>>) attributes {dimension_semantics = [#tpu.dimension_semantics<arbitrary>], iteration_bounds = array<i64: 1>, scalar_prefetch = 0 : i64, scratch_operands = 0 : i64, tpu.core_type = #tpu.core_type<tc>, window_params = [{transform_indices = @transform_0, window_bounds = array<i64: 2, 16, 256>}, {pipeline_mode = #tpu.pipeline_mode<synchronous>, transform_indices = @transform_1, window_bounds = array<i64: 16, 1>}, {pipeline_mode = #tpu.pipeline_mode<synchronous>, transform_indices = @transform_2, window_bounds = array<i64: 16, 1>}]} {
    %c0_i32 = arith.constant 0 : i32
    %0 = arith.cmpi eq, %arg0, %c0_i32 : i32
    %1 = arith.extui %0 : i1 to i32
    %c0_i32_0 = arith.constant 0 : i32
    %2 = arith.cmpi ne, %1, %c0_i32_0 : i32
    scf.if %2 {
      %cst_14 = arith.constant 0.000000e+00 : f32
      %17 = vector.broadcast %cst_14 : f32 to vector<16x1xf32>
      %c0_15 = arith.constant 0 : index
      %c0_16 = arith.constant 0 : index
      %18 = vector.load %arg2[%c0_15, %c0_16] : memref<16x1xf32, #tpu.memory_space<vmem>>, vector<16x1xf32>
      tpu.vector_store %arg2[%c0_15, %c0_16], %17 {strides = array<i32>} : memref<16x1xf32, #tpu.memory_space<vmem>>, vector<16x1xf32>,
      %cst_17 = arith.constant 0.000000e+00 : f32
      %19 = vector.broadcast %cst_17 : f32 to vector<16x1xf32>
      %c0_18 = arith.constant 0 : index
      %c0_19 = arith.constant 0 : index
      %20 = vector.load %arg3[%c0_18, %c0_19] : memref<16x1xf32, #tpu.memory_space<vmem>>, vector<16x1xf32>
      tpu.vector_store %arg3[%c0_18, %c0_19], %19 {strides = array<i32>} : memref<16x1xf32, #tpu.memory_space<vmem>>, vector<16x1xf32>,
    } else {
    }
    %c0 = arith.constant 0 : index
    %c0_1 = arith.constant 0 : index
    %c0_2 = arith.constant 0 : index
    %3 = vector.load %arg1[%c0, %c0_1, %c0_2] : memref<2x16x256xf32, #tpu.memory_space<vmem>>, vector<2x16x256xf32>
    %cst = arith.constant dense<0.000000e+00> : vector<16x256xf32>
    %4 = vector.multi_reduction <add>, %3, %cst [0] : vector<2x16x256xf32> to vector<16x256xf32>
    %5 = arith.mulf %3, %3 : vector<2x16x256xf32>
    %cst_3 = arith.constant dense<0.000000e+00> : vector<16x256xf32>
    %6 = vector.multi_reduction <add>, %5, %cst_3 [0] : vector<2x16x256xf32> to vector<16x256xf32>
    %c0_4 = arith.constant 0 : index
    %c0_5 = arith.constant 0 : index
    %7 = vector.load %arg2[%c0_4, %c0_5] : memref<16x1xf32, #tpu.memory_space<vmem>>, vector<16x1xf32>
    %cst_6 = arith.constant dense<0.000000e+00> : vector<16xf32>
    %8 = vector.multi_reduction <add>, %4, %cst_6 [1] : vector<16x256xf32> to vector<16xf32>
    %9 = vector.shape_cast %8 : vector<16xf32> to vector<16x1xf32>
    %10 = arith.addf %7, %9 : vector<16x1xf32>
    %c0_7 = arith.constant 0 : index
    %c0_8 = arith.constant 0 : index
    %11 = vector.load %arg2[%c0_7, %c0_8] : memref<16x1xf32, #tpu.memory_space<vmem>>, vector<16x1xf32>
    tpu.vector_store %arg2[%c0_7, %c0_8], %10 {strides = array<i32>} : memref<16x1xf32, #tpu.memory_space<vmem>>, vector<16x1xf32>,
    %c0_9 = arith.constant 0 : index
    %c0_10 = arith.constant 0 : index
    %12 = vector.load %arg3[%c0_9, %c0_10] : memref<16x1xf32, #tpu.memory_space<vmem>>, vector<16x1xf32>
    %cst_11 = arith.constant dense<0.000000e+00> : vector<16xf32>
    %13 = vector.multi_reduction <add>, %6, %cst_11 [1] : vector<16x256xf32> to vector<16xf32>
    %14 = vector.shape_cast %13 : vector<16xf32> to vector<16x1xf32>
    %15 = arith.addf %12, %14 : vector<16x1xf32>
    %c0_12 = arith.constant 0 : index
    %c0_13 = arith.constant 0 : index
    %16 = vector.load %arg3[%c0_12, %c0_13] : memref<16x1xf32, #tpu.memory_space<vmem>>, vector<16x1xf32>
    tpu.vector_store %arg3[%c0_12, %c0_13], %15 {strides = array<i32>} : memref<16x1xf32, #tpu.memory_space<vmem>>, vector<16x1xf32>,
    return
  }
  func.func @transform_0(%arg0: i32) -> (i32, i32, i32) {
    %c0_i32 = arith.constant 0 : i32
    %c0_i32_0 = arith.constant 0 : i32
    %c0_i32_1 = arith.constant 0 : i32
    return %arg0, %c0_i32, %c0_i32_0 : i32, i32, i32
  }
  func.func @transform_1(%arg0: i32) -> (i32, i32) {
    %c0_i32 = arith.constant 0 : i32
    %c0_i32_0 = arith.constant 0 : i32
    %c0_i32_1 = arith.constant 0 : i32
    return %c0_i32, %c0_i32_0 : i32, i32
  }
  func.func @transform_2(%arg0: i32) -> (i32, i32) {
    %c0_i32 = arith.constant 0 : i32
    %c0_i32_0 = arith.constant 0 : i32
    %c0_i32_1 = arith.constant 0 : i32
    return %c0_i32, %c0_i32_0 : i32, i32
  }
}

module attributes {stable_mosaic.version = 11 : i64} {
  func.func @resblock_kernel(%arg0: i32, %arg1: memref<1x16x256xf32, #tpu.memory_space<vmem>>, %arg2: memref<16x1xf32, #tpu.memory_space<vmem>>, %arg3: memref<16x1xf32, #tpu.memory_space<vmem>>, %arg4: memref<9x8x16xbf16, #tpu.memory_space<vmem>>, %arg5: memref<8x1xf32, #tpu.memory_space<vmem>>, %arg6: memref<1x256xbf16, #tpu.memory_space<vmem>>, %arg7: memref<1x256xbf16, #tpu.memory_space<vmem>>, %arg8: memref<1x8x256xf32, #tpu.memory_space<vmem>>, %arg9: memref<16x512xbf16, #tpu.memory_space<vmem>>) attributes {dimension_semantics = [#tpu.dimension_semantics<parallel>], iteration_bounds = array<i64: 2>, scalar_prefetch = 0 : i64, scratch_operands = 1 : i64, tpu.core_type = #tpu.core_type<tc>, window_params = [{transform_indices = @transform_0, window_bounds = array<i64: 1, 16, 256>}, {pipeline_mode = #tpu.pipeline_mode<synchronous>, transform_indices = @transform_1, window_bounds = array<i64: 16, 1>}, {pipeline_mode = #tpu.pipeline_mode<synchronous>, transform_indices = @transform_2, window_bounds = array<i64: 16, 1>}, {pipeline_mode = #tpu.pipeline_mode<synchronous>, transform_indices = @transform_3, window_bounds = array<i64: 9, 8, 16>}, {pipeline_mode = #tpu.pipeline_mode<synchronous>, transform_indices = @transform_4, window_bounds = array<i64: 8, 1>}, {pipeline_mode = #tpu.pipeline_mode<synchronous>, transform_indices = @transform_5, window_bounds = array<i64: 1, 256>}, {pipeline_mode = #tpu.pipeline_mode<synchronous>, transform_indices = @transform_6, window_bounds = array<i64: 1, 256>}, {transform_indices = @transform_7, window_bounds = array<i64: 1, 8, 256>}]} {
    %c0 = arith.constant 0 : index
    %c0_0 = arith.constant 0 : index
    %c0_1 = arith.constant 0 : index
    %0 = vector.load %arg1[%c0, %c0_0, %c0_1] : memref<1x16x256xf32, #tpu.memory_space<vmem>>, vector<1x16x256xf32>
    %1 = vector.shape_cast %0 : vector<1x16x256xf32> to vector<16x256xf32>
    %c0_2 = arith.constant 0 : index
    %c0_3 = arith.constant 0 : index
    %2 = vector.load %arg2[%c0_2, %c0_3] : memref<16x1xf32, #tpu.memory_space<vmem>>, vector<16x1xf32>
    %3 = vector.broadcast %2 : vector<16x1xf32> to vector<16x256xf32>
    %4 = arith.mulf %1, %3 : vector<16x256xf32>
    %c0_4 = arith.constant 0 : index
    %c0_5 = arith.constant 0 : index
    %5 = vector.load %arg3[%c0_4, %c0_5] : memref<16x1xf32, #tpu.memory_space<vmem>>, vector<16x1xf32>
    %6 = vector.broadcast %5 : vector<16x1xf32> to vector<16x256xf32>
    %7 = arith.addf %4, %6 : vector<16x256xf32>
    %cst = arith.constant 0.000000e+00 : f32
    %8 = vector.broadcast %cst : f32 to vector<16x256xf32>
    %9 = arith.maximumf %7, %8 : vector<16x256xf32>
    %10 = arith.truncf %9 : vector<16x256xf32> to vector<16x256xbf16>
    %cst_6 = arith.constant 0.000000e+00 : bf16
    %11 = vector.broadcast %cst_6 : bf16 to vector<16x128xbf16>
    %c0_7 = arith.constant 0 : index
    %c0_8 = arith.constant 0 : index
    %12 = vector.load %arg9[%c0_7, %c0_8] : memref<16x512xbf16, #tpu.memory_space<vmem>>, vector<16x128xbf16>
    tpu.vector_store %arg9[%c0_7, %c0_8], %11 {strides = array<i32>} : memref<16x512xbf16, #tpu.memory_space<vmem>>, vector<16x128xbf16>,
    %cst_9 = arith.constant 0.000000e+00 : bf16
    %13 = vector.broadcast %cst_9 : bf16 to vector<16x128xbf16>
    %c0_10 = arith.constant 0 : index
    %c384 = arith.constant 384 : index
    %14 = vector.load %arg9[%c0_10, %c384] : memref<16x512xbf16, #tpu.memory_space<vmem>>, vector<16x128xbf16>
    tpu.vector_store %arg9[%c0_10, %c384], %13 {strides = array<i32>} : memref<16x512xbf16, #tpu.memory_space<vmem>>, vector<16x128xbf16>,
    %c0_11 = arith.constant 0 : index
    %c128 = arith.constant 128 : index
    %15 = vector.load %arg9[%c0_11, %c128] : memref<16x512xbf16, #tpu.memory_space<vmem>>, vector<16x256xbf16>
    tpu.vector_store %arg9[%c0_11, %c128], %10 {strides = array<i32>} : memref<16x512xbf16, #tpu.memory_space<vmem>>, vector<16x256xbf16>,
    %c0_12 = arith.constant 0 : index
    %c0_13 = arith.constant 0 : index
    %16 = vector.load %arg6[%c0_12, %c0_13] : memref<1x256xbf16, #tpu.memory_space<vmem>>, vector<1x256xbf16>
    %c0_14 = arith.constant 0 : index
    %c0_15 = arith.constant 0 : index
    %17 = vector.load %arg7[%c0_14, %c0_15] : memref<1x256xbf16, #tpu.memory_space<vmem>>, vector<1x256xbf16>
    %c0_16 = arith.constant 0 : index
    %c111 = arith.constant 111 : index
    %18 = vector.load %arg9[%c0_16, %c111] : memref<16x512xbf16, #tpu.memory_space<vmem>>, vector<16x256xbf16>
    %19 = vector.broadcast %16 : vector<1x256xbf16> to vector<16x256xbf16>
    %20 = arith.mulf %18, %19 : vector<16x256xbf16>
    %c0_17 = arith.constant 0 : index
    %c0_18 = arith.constant 0 : index
    %c0_19 = arith.constant 0 : index
    %21 = vector.load %arg4[%c0_17, %c0_18, %c0_19] : memref<9x8x16xbf16, #tpu.memory_space<vmem>>, vector<1x8x16xbf16>
    %22 = vector.shape_cast %21 : vector<1x8x16xbf16> to vector<8x16xbf16>
    %cst_20 = arith.constant dense<0.000000e+00> : vector<8x256xf32>
    %23 = tpu.matmul %22, %20, %cst_20 {dimension_numbers = #tpu.dot_dimension_numbers<[1], [0], [0], [1], [0, 0, 1, 1], [], []>} : vector<8x16xbf16>, vector<16x256xbf16>, vector<8x256xf32> -> vector<8x256xf32>
    %c0_21 = arith.constant 0 : index
    %c112 = arith.constant 112 : index
    %24 = vector.load %arg9[%c0_21, %c112] : memref<16x512xbf16, #tpu.memory_space<vmem>>, vector<16x256xbf16>
    %c1 = arith.constant 1 : index
    %c0_22 = arith.constant 0 : index
    %c0_23 = arith.constant 0 : index
    %25 = vector.load %arg4[%c1, %c0_22, %c0_23] : memref<9x8x16xbf16, #tpu.memory_space<vmem>>, vector<1x8x16xbf16>
    %26 = vector.shape_cast %25 : vector<1x8x16xbf16> to vector<8x16xbf16>
    %cst_24 = arith.constant dense<0.000000e+00> : vector<8x256xf32>
    %27 = tpu.matmul %26, %24, %cst_24 {dimension_numbers = #tpu.dot_dimension_numbers<[1], [0], [0], [1], [0, 0, 1, 1], [], []>} : vector<8x16xbf16>, vector<16x256xbf16>, vector<8x256xf32> -> vector<8x256xf32>
    %28 = arith.addf %23, %27 : vector<8x256xf32>
    %c0_25 = arith.constant 0 : index
    %c113 = arith.constant 113 : index
    %29 = vector.load %arg9[%c0_25, %c113] : memref<16x512xbf16, #tpu.memory_space<vmem>>, vector<16x256xbf16>
    %30 = vector.broadcast %17 : vector<1x256xbf16> to vector<16x256xbf16>
    %31 = arith.mulf %29, %30 : vector<16x256xbf16>
    %c2 = arith.constant 2 : index
    %c0_26 = arith.constant 0 : index
    %c0_27 = arith.constant 0 : index
    %32 = vector.load %arg4[%c2, %c0_26, %c0_27] : memref<9x8x16xbf16, #tpu.memory_space<vmem>>, vector<1x8x16xbf16>
    %33 = vector.shape_cast %32 : vector<1x8x16xbf16> to vector<8x16xbf16>
    %cst_28 = arith.constant dense<0.000000e+00> : vector<8x256xf32>
    %34 = tpu.matmul %33, %31, %cst_28 {dimension_numbers = #tpu.dot_dimension_numbers<[1], [0], [0], [1], [0, 0, 1, 1], [], []>} : vector<8x16xbf16>, vector<16x256xbf16>, vector<8x256xf32> -> vector<8x256xf32>
    %35 = arith.addf %28, %34 : vector<8x256xf32>
    %c0_29 = arith.constant 0 : index
    %c127 = arith.constant 127 : index
    %36 = vector.load %arg9[%c0_29, %c127] : memref<16x512xbf16, #tpu.memory_space<vmem>>, vector<16x256xbf16>
    %37 = vector.broadcast %16 : vector<1x256xbf16> to vector<16x256xbf16>
    %38 = arith.mulf %36, %37 : vector<16x256xbf16>
    %c3 = arith.constant 3 : index
    %c0_30 = arith.constant 0 : index
    %c0_31 = arith.constant 0 : index
    %39 = vector.load %arg4[%c3, %c0_30, %c0_31] : memref<9x8x16xbf16, #tpu.memory_space<vmem>>, vector<1x8x16xbf16>
    %40 = vector.shape_cast %39 : vector<1x8x16xbf16> to vector<8x16xbf16>
    %cst_32 = arith.constant dense<0.000000e+00> : vector<8x256xf32>
    %41 = tpu.matmul %40, %38, %cst_32 {dimension_numbers = #tpu.dot_dimension_numbers<[1], [0], [0], [1], [0, 0, 1, 1], [], []>} : vector<8x16xbf16>, vector<16x256xbf16>, vector<8x256xf32> -> vector<8x256xf32>
    %42 = arith.addf %35, %41 : vector<8x256xf32>
    %c0_33 = arith.constant 0 : index
    %c128_34 = arith.constant 128 : index
    %43 = vector.load %arg9[%c0_33, %c128_34] : memref<16x512xbf16, #tpu.memory_space<vmem>>, vector<16x256xbf16>
    %c4 = arith.constant 4 : index
    %c0_35 = arith.constant 0 : index
    %c0_36 = arith.constant 0 : index
    %44 = vector.load %arg4[%c4, %c0_35, %c0_36] : memref<9x8x16xbf16, #tpu.memory_space<vmem>>, vector<1x8x16xbf16>
    %45 = vector.shape_cast %44 : vector<1x8x16xbf16> to vector<8x16xbf16>
    %cst_37 = arith.constant dense<0.000000e+00> : vector<8x256xf32>
    %46 = tpu.matmul %45, %43, %cst_37 {dimension_numbers = #tpu.dot_dimension_numbers<[1], [0], [0], [1], [0, 0, 1, 1], [], []>} : vector<8x16xbf16>, vector<16x256xbf16>, vector<8x256xf32> -> vector<8x256xf32>
    %47 = arith.addf %42, %46 : vector<8x256xf32>
    %c0_38 = arith.constant 0 : index
    %c129 = arith.constant 129 : index
    %48 = vector.load %arg9[%c0_38, %c129] : memref<16x512xbf16, #tpu.memory_space<vmem>>, vector<16x256xbf16>
    %49 = vector.broadcast %17 : vector<1x256xbf16> to vector<16x256xbf16>
    %50 = arith.mulf %48, %49 : vector<16x256xbf16>
    %c5 = arith.constant 5 : index
    %c0_39 = arith.constant 0 : index
    %c0_40 = arith.constant 0 : index
    %51 = vector.load %arg4[%c5, %c0_39, %c0_40] : memref<9x8x16xbf16, #tpu.memory_space<vmem>>, vector<1x8x16xbf16>
    %52 = vector.shape_cast %51 : vector<1x8x16xbf16> to vector<8x16xbf16>
    %cst_41 = arith.constant dense<0.000000e+00> : vector<8x256xf32>
    %53 = tpu.matmul %52, %50, %cst_41 {dimension_numbers = #tpu.dot_dimension_numbers<[1], [0], [0], [1], [0, 0, 1, 1], [], []>} : vector<8x16xbf16>, vector<16x256xbf16>, vector<8x256xf32> -> vector<8x256xf32>
    %54 = arith.addf %47, %53 : vector<8x256xf32>
    %c0_42 = arith.constant 0 : index
    %c143 = arith.constant 143 : index
    %55 = vector.load %arg9[%c0_42, %c143] : memref<16x512xbf16, #tpu.memory_space<vmem>>, vector<16x256xbf16>
    %56 = vector.broadcast %16 : vector<1x256xbf16> to vector<16x256xbf16>
    %57 = arith.mulf %55, %56 : vector<16x256xbf16>
    %c6 = arith.constant 6 : index
    %c0_43 = arith.constant 0 : index
    %c0_44 = arith.constant 0 : index
    %58 = vector.load %arg4[%c6, %c0_43, %c0_44] : memref<9x8x16xbf16, #tpu.memory_space<vmem>>, vector<1x8x16xbf16>
    %59 = vector.shape_cast %58 : vector<1x8x16xbf16> to vector<8x16xbf16>
    %cst_45 = arith.constant dense<0.000000e+00> : vector<8x256xf32>
    %60 = tpu.matmul %59, %57, %cst_45 {dimension_numbers = #tpu.dot_dimension_numbers<[1], [0], [0], [1], [0, 0, 1, 1], [], []>} : vector<8x16xbf16>, vector<16x256xbf16>, vector<8x256xf32> -> vector<8x256xf32>
    %61 = arith.addf %54, %60 : vector<8x256xf32>
    %c0_46 = arith.constant 0 : index
    %c144 = arith.constant 144 : index
    %62 = vector.load %arg9[%c0_46, %c144] : memref<16x512xbf16, #tpu.memory_space<vmem>>, vector<16x256xbf16>
    %c7 = arith.constant 7 : index
    %c0_47 = arith.constant 0 : index
    %c0_48 = arith.constant 0 : index
    %63 = vector.load %arg4[%c7, %c0_47, %c0_48] : memref<9x8x16xbf16, #tpu.memory_space<vmem>>, vector<1x8x16xbf16>
    %64 = vector.shape_cast %63 : vector<1x8x16xbf16> to vector<8x16xbf16>
    %cst_49 = arith.constant dense<0.000000e+00> : vector<8x256xf32>
    %65 = tpu.matmul %64, %62, %cst_49 {dimension_numbers = #tpu.dot_dimension_numbers<[1], [0], [0], [1], [0, 0, 1, 1], [], []>} : vector<8x16xbf16>, vector<16x256xbf16>, vector<8x256xf32> -> vector<8x256xf32>
    %66 = arith.addf %61, %65 : vector<8x256xf32>
    %c0_50 = arith.constant 0 : index
    %c145 = arith.constant 145 : index
    %67 = vector.load %arg9[%c0_50, %c145] : memref<16x512xbf16, #tpu.memory_space<vmem>>, vector<16x256xbf16>
    %68 = vector.broadcast %17 : vector<1x256xbf16> to vector<16x256xbf16>
    %69 = arith.mulf %67, %68 : vector<16x256xbf16>
    %c8 = arith.constant 8 : index
    %c0_51 = arith.constant 0 : index
    %c0_52 = arith.constant 0 : index
    %70 = vector.load %arg4[%c8, %c0_51, %c0_52] : memref<9x8x16xbf16, #tpu.memory_space<vmem>>, vector<1x8x16xbf16>
    %71 = vector.shape_cast %70 : vector<1x8x16xbf16> to vector<8x16xbf16>
    %cst_53 = arith.constant dense<0.000000e+00> : vector<8x256xf32>
    %72 = tpu.matmul %71, %69, %cst_53 {dimension_numbers = #tpu.dot_dimension_numbers<[1], [0], [0], [1], [0, 0, 1, 1], [], []>} : vector<8x16xbf16>, vector<16x256xbf16>, vector<8x256xf32> -> vector<8x256xf32>
    %73 = arith.addf %66, %72 : vector<8x256xf32>
    %c0_54 = arith.constant 0 : index
    %c0_55 = arith.constant 0 : index
    %74 = vector.load %arg5[%c0_54, %c0_55] : memref<8x1xf32, #tpu.memory_space<vmem>>, vector<8x1xf32>
    %75 = vector.broadcast %74 : vector<8x1xf32> to vector<8x256xf32>
    %76 = arith.addf %73, %75 : vector<8x256xf32>
    %77 = vector.shape_cast %76 : vector<8x256xf32> to vector<1x8x256xf32>
    %c0_56 = arith.constant 0 : index
    %c0_57 = arith.constant 0 : index
    %c0_58 = arith.constant 0 : index
    %78 = vector.load %arg8[%c0_56, %c0_57, %c0_58] : memref<1x8x256xf32, #tpu.memory_space<vmem>>, vector<1x8x256xf32>
    tpu.vector_store %arg8[%c0_56, %c0_57, %c0_58], %77 {strides = array<i32>} : memref<1x8x256xf32, #tpu.memory_space<vmem>>, vector<1x8x256xf32>,
    return
  }
  func.func @transform_0(%arg0: i32) -> (i32, i32, i32) {
    %c0_i32 = arith.constant 0 : i32
    %c0_i32_0 = arith.constant 0 : i32
    %c0_i32_1 = arith.constant 0 : i32
    return %arg0, %c0_i32, %c0_i32_0 : i32, i32, i32
  }
  func.func @transform_1(%arg0: i32) -> (i32, i32) {
    %c0_i32 = arith.constant 0 : i32
    %c0_i32_0 = arith.constant 0 : i32
    %c0_i32_1 = arith.constant 0 : i32
    return %c0_i32, %c0_i32_0 : i32, i32
  }
  func.func @transform_2(%arg0: i32) -> (i32, i32) {
    %c0_i32 = arith.constant 0 : i32
    %c0_i32_0 = arith.constant 0 : i32
    %c0_i32_1 = arith.constant 0 : i32
    return %c0_i32, %c0_i32_0 : i32, i32
  }
  func.func @transform_3(%arg0: i32) -> (i32, i32, i32) {
    %c0_i32 = arith.constant 0 : i32
    %c0_i32_0 = arith.constant 0 : i32
    %c0_i32_1 = arith.constant 0 : i32
    %c0_i32_2 = arith.constant 0 : i32
    return %c0_i32, %c0_i32_0, %c0_i32_1 : i32, i32, i32
  }
  func.func @transform_4(%arg0: i32) -> (i32, i32) {
    %c0_i32 = arith.constant 0 : i32
    %c0_i32_0 = arith.constant 0 : i32
    %c0_i32_1 = arith.constant 0 : i32
    return %c0_i32, %c0_i32_0 : i32, i32
  }
  func.func @transform_5(%arg0: i32) -> (i32, i32) {
    %c0_i32 = arith.constant 0 : i32
    %c0_i32_0 = arith.constant 0 : i32
    %c0_i32_1 = arith.constant 0 : i32
    return %c0_i32, %c0_i32_0 : i32, i32
  }
  func.func @transform_6(%arg0: i32) -> (i32, i32) {
    %c0_i32 = arith.constant 0 : i32
    %c0_i32_0 = arith.constant 0 : i32
    %c0_i32_1 = arith.constant 0 : i32
    return %c0_i32, %c0_i32_0 : i32, i32
  }
  func.func @transform_7(%arg0: i32) -> (i32, i32, i32) {
    %c0_i32 = arith.constant 0 : i32
    %c0_i32_0 = arith.constant 0 : i32
    %c0_i32_1 = arith.constant 0 : i32
    return %arg0, %c0_i32, %c0_i32_0 : i32, i32, i32
  }
}

</mosaic_0001>

<bundles_post_ra>
// kernel: resblock_forward.2
= control target key start
LH: loop header
LB: loop body
LE: loop exit
PB: predicated region body
PF: predicated region fallthrough
CT: control target
= control target key end

     0   :  { %vm14_vm0 = vcmask 7168   ;;  %v77_v3 = vmov 0.0   ;;  %s161_s0 = inlined_call_operand.vmem [shape: f32[2,16,256], index: 0, kind: input, shape index: {}]   ;;  %s162_s2 = inlined_call_operand.vmem [shape: f32[16,1], index: 2, kind: output, shape index: {1}]   ;;  %s163_s1 = inlined_call_operand.vmem [shape: f32[16,1], index: 1, kind: output, shape index: {0}]  }
   0x1   :  { %v19_v0 = vld [vmem:[%s161_s0] sm:$0xff]  ;;  %v20_v1 = vld [vmem:[%s161_s0 + $0x8] sm:$0xff]  ;;  %17 = vst.msk [vmem:[%s162_s2] sm:$0xff] %vm14_vm0, %v77_v3  ;;  %18 = vst.msk [vmem:[%s162_s2 + $0x8] sm:$0xff] %vm14_vm0, %v77_v3 }
   0x2   :  { %v23_v2 = vld [vmem:[%s161_s0 + $0x20] sm:$0xff]  ;;  %v24_v4 = vld [vmem:[%s161_s0 + $0x28] sm:$0xff]  ;;  %v31_v5 = vmul.f32 %v19_v0, %v19_v0  ;;  %v32_v6 = vmul.f32 %v20_v1, %v20_v1  ;;  %v21_v9 = vld [vmem:[%s161_s0 + $0x10] sm:$0xff]  ;;  %15 = vst.msk [vmem:[%s163_s1] sm:$0xff] %vm14_vm0, %v77_v3 }
   0x3   :  { %v35_v7 = vmul.f32 %v23_v2, %v23_v2  ;;  %v27_v8 = vadd.f32 %v23_v2, %v19_v0  ;;  %v22_v10 = vld [vmem:[%s161_s0 + $0x18] sm:$0xff]  ;;  %v36_v11 = vmul.f32 %v24_v4, %v24_v4  ;;  %v28_v12 = vadd.f32 %v24_v4, %v20_v1  ;;  %v25_v13 = vld [vmem:[%s161_s0 + $0x30] sm:$0xff]  ;;  %16 = vst.msk [vmem:[%s163_s1 + $0x8] sm:$0xff] %vm14_vm0, %v77_v3 }
   0x4   :  { %v26_v14 = vld [vmem:[%s161_s0 + $0x38] sm:$0xff]  ;;  %v33_v15 = vmul.f32 %v21_v9, %v21_v9  ;;  %v34_v16 = vmul.f32 %v22_v10, %v22_v10  ;;  %v37_v18 = vmul.f32 %v25_v13, %v25_v13  ;;  %v29_v20 = vadd.f32 %v25_v13, %v21_v9 }
   0x5   :  { %v39_v17 = vadd.f32 %v35_v7, %v31_v5  ;;  %v38_v19 = vmul.f32 %v26_v14, %v26_v14  ;;  %v40_v21 = vadd.f32 %v36_v11, %v32_v6  ;;  %v45_v22 = vadd.f32 %v28_v12, %v27_v8 }
   0x6   :  { %v30_v23 = vadd.f32 %v26_v14, %v22_v10  ;;  %v41_v24 = vadd.f32 %v37_v18, %v33_v15 }
   0x7   :  { %v42_v25 = vadd.f32 %v38_v19, %v34_v16  ;;  %v58_v26 = vadd.f32 %v40_v21, %v39_v17  ;;  %46 = vadd.xlane.f32.xlu0 %v45_v22 }
   0x8   :  { %v48_v27 = vadd.f32 %v30_v23, %v29_v20  ;;  %v56_v30 = vld [vmem:[%s162_s2] sm:$0xff]  ;;  %v57_v36 = vld [vmem:[%s162_s2 + $0x8] sm:$0xff] }
   0x9   :  { %59 = vadd.xlane.f32.xlu1 %v58_v26  ;;  %v61_v28 = vadd.f32 %v42_v25, %v41_v24  ;;  %v43_v29 = vld [vmem:[%s163_s1] sm:$0xff] }
   0xa   :  { %v44_v34 = vld [vmem:[%s163_s1 + $0x8] sm:$0xff] }
   0xb   :  { %49 = vadd.xlane.f32.xlu0 %v48_v27 }
   0xd   :  { %62 = vadd.xlane.f32.xlu1 %v61_v28 }
  0x94   :  { %v47_v31 = vpop.xlane.xlu0 %46 }
  0x95   :  { %v51_v32 = vadd.f32 %v47_v31, %v43_v29 }
  0x96   :  { %v60_v33 = vpop.xlane.xlu1 %59 }
  0x97   :  { %v64_v35 = vadd.f32 %v60_v33, %v56_v30  ;;  %54 = vst.msk [vmem:[%s163_s1] sm:$0xff] %vm14_vm0, %v51_v32 }
  0x98   :  { %v50_v37 = vpop.xlane.xlu0 %49 }
  0x99   :  { %66 = vst.msk [vmem:[%s162_s2] sm:$0xff] %vm14_vm0, %v64_v35  ;;  %v52_v38 = vadd.f32 %v50_v37, %v44_v34 }
  0x9a   :  { %v63_v39 = vpop.xlane.xlu1 %62 }
  0x9b   :  { %v65_v40 = vadd.f32 %v63_v39, %v57_v36  ;;  %55 = vst.msk [vmem:[%s163_s1 + $0x8] sm:$0xff] %vm14_vm0, %v52_v38 }
  0x9d   :  { %67 = vst.msk [vmem:[%s162_s2 + $0x8] sm:$0xff] %vm14_vm0, %v65_v40 }

// kernel: resblock_forward.3
= control target key start
LH: loop header
LB: loop body
LE: loop exit
PB: predicated region body
PF: predicated region fallthrough
CT: control target
= control target key end

     0   :  { %s1196_s24 = smov 0   ;;  %s1366_s0 = inlined_call_operand.vmem [shape: f32[2,16,256], index: 0, kind: input, shape index: {}]   ;;  %s1367_s1 = inlined_call_operand.vmem [shape: f32[16,1], index: 1, kind: input, shape index: {}]   ;;  %s1368_s2 = inlined_call_operand.vmem [shape: f32[16,1], index: 2, kind: input, shape index: {}]   ;;  %s1369_s3 = inlined_call_operand.vmem [shape: bf16[9,8,16], index: 3, kind: input, shape index: {}]   ;;  %s1370_s4 = inlined_call_operand.vmem [shape: f32[8,1], index: 4, kind: input, shape index: {}]   ;;  %s1371_s5 = inlined_call_operand.vmem [shape: bf16[1,256], index: 5, kind: input, shape index: {}]   ;;  %s1372_s6 = inlined_call_operand.vmem [shape: bf16[1,256], index: 6, kind: input, shape index: {}]   ;;  %s1373_s7 = inlined_call_operand.vmem [shape: f32[2,8,256], index: 7, kind: output, shape index: {}]  }
   0x1 LB: > { %s1086_s25 = sadd.s32 4294967295, %s1144_s24   ;;  %p1090_p0 = scmp.ge.s32.totalorder %s1144_s24, 1  ;;  %s1144_s24 = sphi %s1196_s24, %s17_s24  }
   0x2   : > { %p237_p1 = scmp.lt.s32.totalorder %s1144_s24, 3 }
   0x4   : > { %p238_p2 = pnand %p1090_p0, %p237_p1 }
   0x5   : > { %v300_v0 = vld [vmem:[%s1368_s2] sm:$0xff] (!%p238_p2)  ;;  %v343_v2 = vlaneseq (!%p238_p2)  ;;  %v1146_v3 = vmov (!%p238_p2), 0   ;;  %v1147_v5 = vmov (!%p238_p2), 1966171168   ;;  %v301_v9 = vld [vmem:[%s1368_s2 + $0x8] sm:$0xff] (!%p238_p2)  ;;  %s1148_s15 = smov (!%p238_p2), 111  }
   0x6   : > { %241 = sbr.rel (%p238_p2) target bundleno = 530 (0x212), region = 48  ;;  %v284_v1 = vld [vmem:[%s1367_s1] sm:$0xff] (!%p238_p2)  ;;  %1137 = vset.pattern.permute.xlu1 (!%p238_p2), %v1146_v3  ;;  %1136 = vset.pattern.permute.xlu0 (!%p238_p2), %v1146_v3  ;;  %v341_v6 = vunpack.c.l.s4 (!%p238_p2), %v1147_v5  ;;  %v285_v10 = vld [vmem:[%s1367_s1 + $0x8] sm:$0xff] (!%p238_p2)  ;;  %s1149_s16 = smov (!%p238_p2), 113   ;;  %vm545_vm0 = vcmask (!%p238_p2), 924672   ;;  %vm374_vm1 = vcmask (!%p238_p2), 908288  }
   0x7   : > { %v1095_v4 = vld.sshfl [vmem:[%s1371_s5] sm:$0x11 pattern:$0x75316420] (!%p238_p2)  ;;  %304 = vperm.xlu1 (!%p238_p2), %1137, %v300_v0   ;;  %288 = vperm.xlu0 (!%p238_p2), %1136, %v284_v1   ;;  %v344_v7 = vshrl.u32 (!%p238_p2), %v343_v2, 7  ;;  %s1150_s17 = smov (!%p238_p2), 127  }
   0x8   : > { %v1099_v8 = vld.sshfl [vmem:[%s1372_s6] sm:$0x11 pattern:$0x75316420] (!%p238_p2)  ;;  %v339_v11 = vcombine.high (!%p238_p2), %v1095_v4, %v1095_v4  ;;  %v342_v12 = vunpack.c.0.s8 (!%p238_p2), %v341_v6  ;;  %435 = vmatprep.mubr.bf16.mxu0 (!%p238_p2), %v1146_v3  ;;  %493 = vmatprep.mubr.bf16.mxu1 (!%p238_p2), %v1146_v3  ;;  %s1151_s18 = smov (!%p238_p2), 1   ;;  %s1152_s19 = smov (!%p238_p2), 15  }
   0x9   : > { %v510_v13 = vcombine.high (!%p238_p2), %v1099_v8, %v1099_v8  ;;  %v359_v15 = vsub.s32 (!%p238_p2), 0, %v344_v7  ;;  %s1153_s20 = smov (!%p238_p2), 17   ;;  %s1154_s21 = smov (!%p238_p2), 16   ;;  %vm622_vm2 = vcmask (!%p238_p2), 1039360   ;;  %vm641_vm3 = vcmask (!%p238_p2), 7168  }
   0xa   : > { %v345_v14 = vsub.s32 (!%p238_p2), %v342_v12, %v344_v7  ;;  %p269_p3 = scmp.lt.s32.totalorder (!%p238_p2), %s1086_s25, 1  ;;  %vm564_vm4 = vcmask (!%p238_p2), 121856   ;;  %s1155_s28 = smov (!%p238_p2), 112   ;;  %vm453_vm5 = vcmask (!%p238_p2), 138240   ;;  %vm394_vm6 = vcmask (!%p238_p2), 130048  }
   0xb   : > { %309 = vperm.xlu1 (!%p238_p2), %1137, %v301_v9   ;;  %293 = vperm.xlu0 (!%p238_p2), %1136, %v285_v10   ;;  %vm898_vm7 = vcmask (!%p238_p2), 916480  }
   0xc   : > { %v353_v16 = vrot.slane (!%p238_p2), %v339_v11, %v345_v14  ;;  %v346_v17 = vrot.slane (!%p238_p2), %v1095_v4, %v345_v14  ;;  %v524_v18 = vrot.slane (!%p238_p2), %v510_v13, %v345_v14  ;;  %v517_v19 = vrot.slane (!%p238_p2), %v1099_v8, %v345_v14 }
   0xd   : > { %s1375_s25 = smov (!%p269_p3, %s1086_s25), 1 }
   0xe   : > { %v362_v20 = vpack.i.b16 %v353_v16, %v353_v16  ;;  %v355_v21 = vpack.i.b16 %v346_v17, %v346_v17  ;;  %v533_v22 = vpack.i.b16 %v524_v18, %v524_v18  ;;  %v526_v23 = vpack.i.b16 %v517_v19, %v517_v19  ;;  %s1116_s22 = sshll.u32 %s1375_s25, 5 }
   0xf   : > { %s273_s27 = scalar_lea.vmem %s1366_s0, %s1116_s22 }
  0x10   : > { %v367_v24 = vrot.slane %v362_v20, %v359_v15  ;;  %v360_v25 = vrot.slane %v355_v21, %v359_v15  ;;  %v538_v26 = vrot.slane %v533_v22, %v359_v15  ;;  %v531_v27 = vrot.slane %v526_v23, %v359_v15  ;;  %v282_v30 = vld [vmem:[%s273_s27 + $0x10] sm:$0xff]  ;;  %v283_v31 = vld [vmem:[%s273_s27 + $0x18] sm:$0xff]  ;;  %v280_v34 = vld [vmem:[%s273_s27] sm:$0xff] }
  0x11   : > { %v281_v35 = vld [vmem:[%s273_s27 + $0x8] sm:$0xff]  ;;  %v1021_v23 = vld [vmem:[%s1370_s4] sm:$0xff] }
  0x12   : > { %372 = vrot.lane.b32.xlu1 %v367_v24, %s1148_s15  ;;  %370 = vrot.lane.b32.xlu0 %v360_v25, %s1148_s15 }
  0x16   : > { %543 = vrot.lane.b32.xlu1 %v538_v26, %s1149_s16  ;;  %541 = vrot.lane.b32.xlu0 %v531_v27, %s1149_s16 }
  0x1a   : > { %620 = vrot.lane.b32.xlu1 %v367_v24, %s1150_s17  ;;  %618 = vrot.lane.b32.xlu0 %v360_v25, %s1150_s17 }
  0x1e   : > { %745 = vrot.lane.b32.xlu1 %v538_v26, %s1151_s18  ;;  %743 = vrot.lane.b32.xlu0 %v531_v27, %s1151_s18 }
  0x22   : > { %817 = vrot.lane.b32.xlu1 %v367_v24, %s1152_s19  ;;  %815 = vrot.lane.b32.xlu0 %v360_v25, %s1152_s19 }
  0x26   : > { %951 = vrot.lane.b32.xlu1 %v538_v26, %s1153_s20  ;;  %949 = vrot.lane.b32.xlu0 %v531_v27, %s1153_s20 }
  0x2a   : > { %388 = vrot.lane.b32.xlu0 %v1146_v3, %s1154_s21 }
  0x86   : > { %v305_v28 = vpop.permute.xlu1 %304  ;;  %v289_v29 = vpop.permute.xlu0 %288 }
  0x87   : > { %v296_v38 = vmul.f32 %v289_v29, %v280_v34  ;;  %v297_v39 = vmul.f32 %v289_v29, %v281_v35 }
  0x89   : > { %v312_v45 = vadd.f32 %v305_v28, %v296_v38  ;;  %v313_v46 = vadd.f32 %v305_v28, %v297_v39  ;;  %v382_v38 = vld [vmem:[%s1369_s3] sm:$0xf] }
  0x8a   : > { %v310_v32 = vpop.permute.xlu1 %309  ;;  %v294_v33 = vpop.permute.xlu0 %293 }
  0x8b   : > { %v298_v36 = vmul.f32 %v294_v33, %v282_v30  ;;  %v299_v37 = vmul.f32 %v294_v33, %v283_v31  ;;  %v316_v52 = vmax.f32 %v312_v45, 0.0  ;;  %v317_v53 = vmax.f32 %v313_v46, 0.0  ;;  %v1096_v33 = vld [vmem:[%s1369_s3 + $0x4] sm:$0xf] }
  0x8d   : > { %v314_v43 = vadd.f32 %v310_v32, %v298_v36  ;;  %v315_v44 = vadd.f32 %v310_v32, %v299_v37 }
  0x8e   : > { %v373_v40 = vpop.permute.xlu1 %372  ;;  %v371_v41 = vpop.permute.xlu0 %370 }
  0x8f   : > { %v379_v42 = vmul.bf16 0, %v371_v41  ;;  %v318_v49 = vmax.f32 %v314_v43, 0.0  ;;  %v319_v50 = vmax.f32 %v315_v44, 0.0  ;;  %v375_v62 = vsel %vm374_vm1, %v371_v41, %v373_v40  ;;  %v1100_v43 = vld [vmem:[%s1369_s3 + $0x8] sm:$0xf] }
  0x91   : > { %447 = vrot.lane.b32.xlu1 %v379_v42, %s1153_s20  ;;  %v1252_v57 = vpack.c.bf16 %v318_v49, %v316_v52  ;;  %v1254_v58 = vpack.c.bf16 %v319_v50, %v317_v53  ;;  %v1104_v52 = vld [vmem:[%s1369_s3 + $0x10] sm:$0xf] }
  0x92   : > { %v544_v47 = vpop.permute.xlu1 %543  ;;  %v542_v48 = vpop.permute.xlu0 %541 }
  0x93   : > { %v550_v51 = vmul.bf16 0, %v542_v48  ;;  %v381_v60 = vmul.bf16 %v373_v40, %v1254_v58  ;;  %v546_v61 = vsel %vm545_vm0, %v542_v48, %v544_v47  ;;  %v380_v63 = vmul.bf16 %v375_v62, %v1252_v57 }
  0x94   : > { %v551_v0 = vmul.bf16 %v546_v61, %v1252_v57  ;;  %v552_v4 = vmul.bf16 %v544_v47, %v1254_v58 }
  0x95   : > { %558 = vrot.lane.b32.xlu0 %v550_v51, %s1152_s19  ;;  %v1102_v51 = vld [vmem:[%s1369_s3 + $0xc] sm:$0xf] }
  0x96   : > { %v621_v54 = vpop.permute.xlu1 %620  ;;  %v619_v55 = vpop.permute.xlu0 %618 }
  0x97   : > { %v627_v56 = vmul.bf16 0, %v619_v55  ;;  %v629_v7 = vmul.bf16 %v621_v54, %v1254_v58  ;;  %v623_v8 = vsel %vm622_vm2, %v619_v55, %v621_v54 }
  0x98   : > { %v628_v10 = vmul.bf16 %v623_v8, %v1252_v57 }
  0x99   : > { %635 = vrot.lane.b32.xlu1 %v627_v56, %s1151_s18  ;;  %390 = vrot.lane.b32.xlu0 %v1252_v57, %s1154_s21 }
  0x9a   : > { %v746_v59 = vpop.permute.xlu1 %745  ;;  %v744_v5 = vpop.permute.xlu0 %743 }
  0x9b   : > { %v753_v6 = vmul.bf16 0, %v746_v59  ;;  %v747_v9 = vsel %vm641_vm3, %v744_v5, %v746_v59  ;;  %v751_v13 = vmul.bf16 %v744_v5, %v1252_v57 }
  0x9c   : > { %v752_v11 = vmul.bf16 %v747_v9, %v1254_v58  ;;  %v1112_v9 = vld [vmem:[%s1369_s3 + $0x20] sm:$0xf] }
  0x9d   : > { %392 = vrot.lane.b32.xlu1 %v1254_v58, %s1154_s21  ;;  %451 = vrot.lane.b32.xlu0 %v381_v60, %s1153_s20  ;;  %v1106_v60 = vld [vmem:[%s1369_s3 + $0x14] sm:$0xf] }
  0x9e   : > { %v818_v1 = vpop.permute.xlu1 %817  ;;  %v816_v12 = vpop.permute.xlu0 %815 }
  0x9f   : > { %v825_v2 = vmul.bf16 0, %v818_v1  ;;  %v819_v14 = vsel %vm564_vm4, %v816_v12, %v818_v1  ;;  %v823_v18 = vmul.bf16 %v816_v12, %v1252_v57  ;;  %v1108_v1 = vld [vmem:[%s1369_s3 + $0x18] sm:$0xf] }
  0xa0   : > { %v824_v15 = vmul.bf16 %v819_v14, %v1254_v58 }
  0xa1   : > { %449 = vrot.lane.b32.xlu1 %v380_v63, %s1153_s20  ;;  %560 = vrot.lane.b32.xlu0 %v551_v0, %s1152_s19 }
  0xa2   : > { %v952_v16 = vpop.permute.xlu1 %951  ;;  %v950_v17 = vpop.permute.xlu0 %949 }
  0xa3   : > { %v953_v19 = vsel %vm453_vm5, %v950_v17, %v952_v16  ;;  %v959_v20 = vmul.bf16 0, %v952_v16  ;;  %v957_v22 = vmul.bf16 %v950_v17, %v1252_v57 }
  0xa4   : > { %v958_v21 = vmul.bf16 %v953_v19, %v1254_v58 }
  0xa5   : > { %562 = vrot.lane.b32.xlu1 %v552_v4, %s1152_s19  ;;  %835 = vrot.lane.b32.xlu0 %v825_v2, %s1149_s16 }
  0xa6   : > { %v389_v24 = vpop.permute.xlu0 %388 }
  0xa9   : > { %763 = vrot.lane.b32.xlu1 %v753_v6, %s1150_s17  ;;  %639 = vrot.lane.b32.xlu0 %v629_v7, %s1151_s18  ;;  %v1110_v6 = vld [vmem:[%s1369_s3 + $0x1c] sm:$0xf] }
  0xad   : > { %637 = vrot.lane.b32.xlu1 %v628_v10, %s1151_s18  ;;  %761 = vrot.lane.b32.xlu0 %v752_v11, %s1150_s17 }
  0xb1   : > { %896 = vrot.lane.b32.xlu1 %v1146_v3, %s1155_s28  ;;  %759 = vrot.lane.b32.xlu0 %v751_v13, %s1150_s17 }
  0xb5   : > { %833 = vrot.lane.b32.xlu1 %v824_v15, %s1149_s16  ;;  %894 = vrot.lane.b32.xlu0 %v1254_v58, %s1155_s28 }
  0xb9   : > { %831 = vrot.lane.b32.xlu1 %v823_v18, %s1149_s16  ;;  %892 = vrot.lane.b32.xlu0 %v1252_v57, %s1155_s28  ;;  %s1117_s28 = sshll.u32 %s1375_s25, 4 }
  0xba   : > { %s278_s8 = scalar_lea.vmem %s1373_s7, %s1117_s28 }
  0xbd   : > { %967 = vrot.lane.b32.xlu1 %v958_v21, %s1148_s15  ;;  %969 = vrot.lane.b32.xlu0 %v959_v20, %s1148_s15 }
  0xc1   : > { %965 = vrot.lane.b32.xlu1 %v957_v22, %s1148_s15  ;;  %1024 = vperm.xlu0 %1136, %v1021_v23  }
 0x103   : > { %v448_v25 = vpop.permute.xlu1 %447 }
 0x107   : > { %v559_v26 = vpop.permute.xlu0 %558 }
 0x10b   : > { %v636_v27 = vpop.permute.xlu1 %635  ;;  %v391_v28 = vpop.permute.xlu0 %390 }
 0x10c   : > { %v395_v32 = vsel %vm394_vm6, %v389_v24, %v391_v28 }
 0x10f   : > { %v393_v29 = vpop.permute.xlu1 %392  ;;  %v452_v30 = vpop.permute.xlu0 %451 }
 0x110   : > { %v396_v31 = vsel %vm394_vm6, %v391_v28, %v393_v29 }
 0x111   : > { %403 = vmatprep.subr.bf16.mxu0 %v396_v31 }
 0x112   : > { %404 = vmatpush1.bf16.msra.mxu0 %v395_v32 }
 0x113   : > { %v450_v34 = vpop.permute.xlu1 %449  ;;  %v561_v35 = vpop.permute.xlu0 %560 }
 0x114   : > { %v455_v36 = vsel %vm453_vm5, %v450_v34, %v452_v30  ;;  %v454_v37 = vsel %vm453_vm5, %v448_v25, %v450_v34  ;;  %v565_v42 = vsel %vm564_vm4, %v559_v26, %v561_v35 }
 0x115   : > { %461 = vmatprep.subr.bf16.mxu1 %v455_v36  ;;  %1097 = vmatmul.mubr.msk.bf16.vlgmr.msra.gmra.mrb[0].mxu0 %vm394_vm6, %v1096_v33 }
 0x116   : > { %462 = vmatpush1.bf16.msra.mxu1 %v454_v37  ;;  %604 = vmatprep.mubr.bf16.mxu0 %v1146_v3 }
 0x117   : > { %v563_v39 = vpop.permute.xlu1 %562  ;;  %v836_v40 = vpop.permute.xlu0 %835 }
 0x118   : > { %v566_v41 = vsel %vm564_vm4, %v561_v35, %v563_v39 }
 0x119   : > { %572 = vmatprep.subr.bf16.mxu0 %v566_v41  ;;  %1098 = vmatmul.mubr.msk.bf16.vlgmr.msra.gmra.mrb[0].mxu1 %vm394_vm6, %v382_v38 }
 0x11a   : > { %573 = vmatpush1.bf16.msra.mxu0 %v565_v42  ;;  %681 = vmatprep.mubr.bf16.mxu1 %v1146_v3 }
 0x11b   : > { %697 = vmatprep.subr.bf16.mxu0 %v1254_v58  ;;  %v764_v44 = vpop.permute.xlu1 %763  ;;  %v640_v45 = vpop.permute.xlu0 %639 }
 0x11d   : > { %1101 = vmatmul.mubr.msk.bf16.vlgmr.msra.gmra.mrb[4].mxu0 %vm394_vm6, %v1100_v43 }
 0x11e   : > { %698 = vmatpush1.bf16.msra.mxu0 %v1252_v57  ;;  %729 = vmatprep.mubr.bf16.mxu0 %v1146_v3 }
 0x11f   : > { %v638_v46 = vpop.permute.xlu1 %637  ;;  %v762_v47 = vpop.permute.xlu0 %761 }
 0x120   : > { %v642_v48 = vsel %vm641_vm3, %v636_v27, %v638_v46  ;;  %v643_v49 = vsel %vm641_vm3, %v638_v46, %v640_v45  ;;  %v766_v50 = vsel %vm622_vm2, %v762_v47, %v764_v44 }
 0x121   : > { %649 = vmatprep.subr.bf16.mxu1 %v643_v49 }
 0x122   : > { %650 = vmatpush1.bf16.msra.mxu1 %v642_v48 }
 0x123   : > { %772 = vmatprep.subr.bf16.mxu1 %v766_v50  ;;  %v897_v53 = vpop.permute.xlu1 %896  ;;  %v760_v54 = vpop.permute.xlu0 %759 }
 0x124   : > { %v765_v55 = vsel %vm622_vm2, %v760_v54, %v762_v47 }
 0x125   : > { %1103 = vmatmul.mubr.msk.bf16.vlgmr.msra.gmra.mrb[4].mxu1 %vm394_vm6, %v1102_v51  ;;  %1105 = vmatmul.mubr.msk.bf16.vlgmr.msra.gmra.mrb[8].mxu0 %vm394_vm6, %v1104_v52 }
 0x126   : > { %773 = vmatpush1.bf16.msra.mxu1 %v765_v55  ;;  %804 = vmatprep.mubr.bf16.mxu1 %v1146_v3 }
 0x127   : > { %v834_v56 = vpop.permute.xlu1 %833  ;;  %876 = vmatprep.mubr.bf16.mxu0 %v1146_v3  ;;  %v895_v57 = vpop.permute.xlu0 %894 }
 0x128   : > { %v838_v58 = vsel %vm545_vm0, %v834_v56, %v836_v40  ;;  %v900_v59 = vsel %vm898_vm7, %v895_v57, %v897_v53 }
 0x129   : > { %844 = vmatprep.subr.bf16.mxu0 %v838_v58  ;;  %906 = vmatprep.subr.bf16.mxu1 %v900_v59 }
 0x12b   : > { %v832_v61 = vpop.permute.xlu1 %831  ;;  %v893_v62 = vpop.permute.xlu0 %892 }
 0x12c   : > { %v837_v63 = vsel %vm545_vm0, %v832_v61, %v834_v56  ;;  %v899_v0 = vsel %vm898_vm7, %v893_v62, %v895_v57 }
 0x12d   : > { %1107 = vmatmul.mubr.msk.bf16.vlgmr.msra.gmra.mrb[8].mxu1 %vm394_vm6, %v1106_v60  ;;  %845 = vmatpush1.bf16.msra.mxu0 %v837_v63 }
 0x12e   : > { %907 = vmatpush1.bf16.msra.mxu1 %v899_v0  ;;  %938 = vmatprep.mubr.bf16.mxu1 %v1146_v3 }
 0x12f   : > { %v968_v2 = vpop.permute.xlu1 %967  ;;  %v970_v4 = vpop.permute.xlu0 %969 }
 0x130   : > { %1109 = vmatmul.mubr.msk.bf16.vlgmr.msra.gmra.mrb[12].mxu0 %vm394_vm6, %v1108_v1  ;;  %v972_v5 = vsel %vm374_vm1, %v968_v2, %v970_v4 }
 0x131   : > { %1010 = vmatprep.mubr.bf16.mxu0 %v1146_v3  ;;  %978 = vmatprep.subr.bf16.mxu0 %v972_v5 }
 0x133   : > { %v966_v7 = vpop.permute.xlu1 %965 }
 0x134   : > { %v971_v8 = vsel %vm374_vm1, %v966_v7, %v968_v2 }
 0x135   : > { %1111 = vmatmul.mubr.msk.bf16.vlgmr.msra.gmra.mrb[12].mxu1 %vm394_vm6, %v1110_v6  ;;  %979 = vmatpush1.bf16.msra.mxu0 %v971_v8 }
 0x138   : > { %1113 = vmatmul.mubr.msk.bf16.vlgmr.msra.gmra.mrb[16].mxu0 %vm394_vm6, %v1112_v9 }
 0x140   : > { %v1025_v58 = vpop.permute.xlu0 %1024 }
 0x1e8   : > { %v437_v10 = vpop.f32.mrb[0].mxu0 }
 0x1e9   : > { %v439_v11 = vpop.f32.mrb[1].mxu0 }
 0x1ea   : > { %v441_v3 = vpop.f32.mrb[2].mxu0 }
 0x1eb   : > { %v442_v12 = vpop.f32.mrb[3].mxu0 }
 0x1ec   : > { %v495_v13 = vpop.f32.mrb[0].mxu1 }
 0x1ed   : > { %v496_v14 = vadd.f32 %v495_v13, %v437_v10  ;;  %v497_v15 = vpop.f32.mrb[1].mxu1 }
 0x1ee   : > { %v498_v16 = vadd.f32 %v497_v15, %v439_v11  ;;  %v499_v17 = vpop.f32.mrb[2].mxu1 }
 0x1ef   : > { %v500_v18 = vpop.f32.mrb[3].mxu1 }
 0x1f0   : > { %v606_v19 = vpop.f32.mrb[4].mxu0 }
 0x1f1   : > { %v613_v20 = vadd.f32 %v606_v19, %v496_v14  ;;  %v608_v21 = vpop.f32.mrb[5].mxu0 }
 0x1f2   : > { %v614_v22 = vadd.f32 %v608_v21, %v498_v16  ;;  %v610_v23 = vpop.f32.mrb[6].mxu0 }
 0x1f3   : > { %v611_v24 = vpop.f32.mrb[7].mxu0 }
 0x1f8   : > { %v683_v25 = vpop.f32.mrb[4].mxu1  ;;  %v731_v26 = vpop.f32.mrb[8].mxu0 }
 0x1f9   : > { %v690_v27 = vadd.f32 %v683_v25, %v613_v20  ;;  %v685_v28 = vpop.f32.mrb[5].mxu1  ;;  %v733_v29 = vpop.f32.mrb[9].mxu0 }
 0x1fa   : > { %v691_v30 = vadd.f32 %v685_v28, %v614_v22  ;;  %v687_v31 = vpop.f32.mrb[6].mxu1  ;;  %v735_v32 = vpop.f32.mrb[10].mxu0 }
 0x1fb   : > { %v738_v33 = vadd.f32 %v731_v26, %v690_v27  ;;  %v688_v34 = vpop.f32.mrb[7].mxu1  ;;  %v736_v35 = vpop.f32.mrb[11].mxu0 }
 0x1fc   : > { %v739_v36 = vadd.f32 %v733_v29, %v691_v30 }
 0x200   : > { %v806_v37 = vpop.f32.mrb[8].mxu1 }
 0x201   : > { %v813_v38 = vadd.f32 %v806_v37, %v738_v33  ;;  %v808_v39 = vpop.f32.mrb[9].mxu1 }
 0x202   : > { %v814_v40 = vadd.f32 %v808_v39, %v739_v36  ;;  %v810_v41 = vpop.f32.mrb[10].mxu1 }
 0x203   : > { %v878_v42 = vpop.f32.mrb[12].mxu0  ;;  %v811_v43 = vpop.f32.mrb[11].mxu1 }
 0x204   : > { %v885_v44 = vadd.f32 %v878_v42, %v813_v38  ;;  %v880_v45 = vpop.f32.mrb[13].mxu0 }
 0x205   : > { %v886_v46 = vadd.f32 %v880_v45, %v814_v40  ;;  %v882_v47 = vpop.f32.mrb[14].mxu0 }
 0x206   : > { %v883_v48 = vpop.f32.mrb[15].mxu0 }
 0x208   : > { %v940_v49 = vpop.f32.mrb[12].mxu1 }
 0x209   : > { %v947_v50 = vadd.f32 %v940_v49, %v885_v44  ;;  %v942_v51 = vpop.f32.mrb[13].mxu1 }
 0x20a   : > { %v948_v52 = vadd.f32 %v942_v51, %v886_v46  ;;  %v944_v53 = vpop.f32.mrb[14].mxu1 }
 0x20b   : > { %v1012_v54 = vpop.f32.mrb[16].mxu0  ;;  %v945_v55 = vpop.f32.mrb[15].mxu1 }
 0x20c   : > { %v1019_v56 = vadd.f32 %v1012_v54, %v947_v50  ;;  %v1014_v57 = vpop.f32.mrb[17].mxu0 }
 0x20d   : > { %v1020_v59 = vadd.f32 %v1014_v57, %v948_v52  ;;  %v1016_v60 = vpop.f32.mrb[18].mxu0 }
 0x20e   : > { %v1027_v61 = vadd.f32 %v1025_v58, %v1019_v56  ;;  %v1017_v62 = vpop.f32.mrb[19].mxu0 }
 0x20f   : > { %v1028_v63 = vadd.f32 %v1025_v58, %v1020_v59 }
 0x210   : > { %1029 = vst [vmem:[%s278_s8] sm:$0xff] %v1027_v61 }
 0x211   : > { %1030 = vst [vmem:[%s278_s8 + $0x8] sm:$0xff] %v1028_v63 }
 0x212 PF: > { %s17_s24 = sadd.s32 1, %s1144_s24  }
 0x213   : > { %p14_p4 = scmp.ge.s32.totalorder %s17_s24, 4  }
 0x215   :  { %16 = sbr.rel (!%p14_p4) target bundleno = 1 (0x1), region = 86 }

</bundles_post_ra>
